<compile_context>
chip_gen: v6e
topology: v6e:2x2x1
jax: 0.10.0
libtpu: 0.0.40
codegen_flags: <defaults>
</compile_context>

<pallas_src>
import functools

import jax
import jax.numpy as jnp
from jax.experimental import pallas as pl
from jax.experimental.pallas import tpu as pltpu


def _round_up(v, m):
    return (v + m - 1) // m * m


def _gelu_exact(x):
    # nn.GELU() default = exact erf formulation.
    return 0.5 * x * (1.0 + jax.lax.erf(x / jnp.sqrt(2.0).astype(x.dtype)))


def _gelu_tanh(x):
    # tanh-approx GELU: transcendental goes to the EUP slot instead of a long
    # erf polynomial on the VALU.
    c = 0.7978845608028654  # sqrt(2/pi)
    return 0.5 * x * (1.0 + jnp.tanh(c * (x + 0.044715 * (x * x * x))))


_GELU = {"exact": _gelu_exact, "tanh": _gelu_tanh}


def adapt_mlp_kernel(x_ref, w1_ref, b1_ref, w2_ref, b2_ref,
                     wd_ref, bd_ref, wu_ref, bu_ref,
                     o_ref, acc_ref, *, adapter_scale, gelu_fn):
    k = pl.program_id(1)

    @pl.when(k == 0)
    def _init():
        # Tiny adapter branch once per row tile; fold (b2 + scale * adpt) into
        # the accumulator init so no extra (tm, C) pass is needed later.
        # TODO(synk): adapter dropout (p=0.1) is a no-op in eval mode;
        #             training-mode dropout is not implemented.
        a = jnp.dot(x_ref[...], wd_ref[...], preferred_element_type=jnp.float32)
        a = gelu_fn(a + bd_ref[...])
        adpt = jnp.dot(a.astype(wu_ref.dtype), wu_ref[...],
                       preferred_element_type=jnp.float32) + bu_ref[...]
        acc_ref[...] = b2_ref[...] + adapter_scale * adpt

    # Wrapped MLPBlock, one hidden-dim chunk per reduction step:
    #   acc += gelu(x @ w1[:, chunk] + b1[chunk]) @ w2[chunk, :]
    h = jnp.dot(x_ref[...], w1_ref[...], preferred_element_type=jnp.float32)
    h = gelu_fn(h + b1_ref[...])
    acc_ref[...] += jnp.dot(h.astype(w2_ref.dtype), w2_ref[...],
                            preferred_element_type=jnp.float32)

    @pl.when(k == pl.num_programs(1) - 1)
    def _store():
        o_ref[...] = acc_ref[...].astype(o_ref.dtype)


def _physical_vmem_bytes():
    try:
        return int(pltpu.get_tpu_info().vmem_capacity_bytes)
    except Exception:
        return 64 * 1024 * 1024  # conservative fallback (v7x per-TensorCore)


def _vmem_need_bytes(tm, tk, c_pad, bn_pad, cd_bytes, out_bytes):
    """Estimate of the double-buffered working set + in-kernel intermediates."""
    b = 0
    b += 2 * tm * c_pad * cd_bytes          # x tile
    b += 2 * c_pad * tk * cd_bytes          # w1 slice
    b += 2 * tk * 4                         # b1 slice
    b += 2 * tk * c_pad * cd_bytes          # w2 slice
    b += 2 * c_pad * 4                      # b2
    b += 2 * c_pad * bn_pad * cd_bytes      # wd
    b += 2 * bn_pad * 4                     # bd
    b += 2 * bn_pad * c_pad * cd_bytes      # wu
    b += 2 * c_pad * 4                      # bu
    b += 2 * tm * c_pad * out_bytes         # output tile
    b += tm * c_pad * 4                     # f32 accumulator scratch
    # f32 hidden (tm, tk) + its bf16 cast, adapter hidden, GELU temps, margin.
    b += tm * tk * (4 + cd_bytes) + tm * bn_pad * 4 + (4 << 20)
    return b


def adapt_mlp_block(x, params, *, adapter_scale=0.1, tm=None, tk=None,
                    compute_dtype=jnp.bfloat16, out_dtype=None, gelu="tanh"):
    """x: (B, N, C).  params: dict of (in, out) weights and (1, out) biases."""
    B, N, C = x.shape
    M = B * N
    mlp_dim = params["w1"].shape[1]
    bn = params["wd"].shape[1]
    out_dtype = x.dtype if out_dtype is None else out_dtype
    gelu_fn = _GELU[gelu]

    cd_bytes = jnp.dtype(compute_dtype).itemsize
    out_bytes = jnp.dtype(out_dtype).itemsize
    phys_vmem = _physical_vmem_bytes()
    vmem_cap = int(phys_vmem * 0.85)

    # Per-generation tile defaults: as many rows per tile as VMEM allows, so
    # w1/w2 are re-streamed from HBM as few times as possible.
    if tm is None:
        tm = 1024 if phys_vmem >= (100 << 20) else 512   # v5e/v6e vs v7x
    if tk is None:
        tk = 1024

    # Padded / tiled dims.  Lane dims -> multiples of 128 (lane-dense stores),
    # row tile -> multiple of 8 (sublane); ragged tails are zero-padded.
    C_pad = _round_up(C, 128)
    bn_pad = _round_up(bn, 128)
    tk = min(tk, _round_up(mlp_dim, 128))
    tm = min(tm, _round_up(M, 8))

    # Shrink tiles until the working set fits the per-core VMEM budget.
    while (_vmem_need_bytes(tm, tk, C_pad, bn_pad, cd_bytes, out_bytes) > vmem_cap
           and tk > 128):
        tk = max(128, _round_up(tk // 2, 128))
    while (_vmem_need_bytes(tm, tk, C_pad, bn_pad, cd_bytes, out_bytes) > vmem_cap
           and tm > 8):
        tm = max(8, _round_up(tm // 2, 8))

    H_pad = _round_up(mlp_dim, tk)
    M_pad = _round_up(M, tm)
    n_row_tiles = M_pad // tm
    n_k = H_pad // tk
    # NOTE: on v7x (2 TensorCores) keep n_row_tiles >= 2 (ideally even) at
    # production sizes so the "parallel" row axis feeds both cores; at ViT
    # sizes (M ~ 4096) the defaults give 4-8 row tiles.

    vmem_limit = max(
        32 << 20,
        min(_vmem_need_bytes(tm, tk, C_pad, bn_pad, cd_bytes, out_bytes) + (8 << 20),
            vmem_cap))

    def pad2(a, r, c, dt):
        return jnp.pad(a, ((0, r - a.shape[0]), (0, c - a.shape[1]))).astype(dt)

    xf = pad2(x.reshape(M, C), M_pad, C_pad, compute_dtype)
    w1 = pad2(params["w1"], C_pad, H_pad, compute_dtype)
    b1 = pad2(params["b1"], 1, H_pad, jnp.float32)
    w2 = pad2(params["w2"], H_pad, C_pad, compute_dtype)
    b2 = pad2(params["b2"], 1, C_pad, jnp.float32)
    wd = pad2(params["wd"], C_pad, bn_pad, compute_dtype)
    bd = pad2(params["bd"], 1, bn_pad, jnp.float32)
    wu = pad2(params["wu"], bn_pad, C_pad, compute_dtype)
    bu = pad2(params["bu"], 1, C_pad, jnp.float32)

    grid = (n_row_tiles, n_k)

    # Cost model: x read once; w1/b1/w2 re-streamed once per row tile;
    # constant-index operands fetched once; output written once.
    flops = 2 * M_pad * C_pad * (2 * H_pad + 2 * bn_pad)
    transcendentals = M_pad * (H_pad + bn_pad)
    streamed = sum(int(a.size) * a.dtype.itemsize for a in (w1, b1, w2))
    fetched_once = sum(int(a.size) * a.dtype.itemsize
                       for a in (xf, b2, wd, bd, wu, bu))
    bytes_accessed = fetched_once + n_row_tiles * streamed + M_pad * C_pad * out_bytes

    out = pl.pallas_call(
        functools.partial(adapt_mlp_kernel, adapter_scale=adapter_scale,
                          gelu_fn=gelu_fn),
        out_shape=jax.ShapeDtypeStruct((M_pad, C_pad), out_dtype),
        grid_spec=pltpu.PrefetchScalarGridSpec(
            num_scalar_prefetch=0,
            grid=grid,
            in_specs=[
                pl.BlockSpec((tm, C_pad), lambda i, k: (i, 0)),      # x rows
                pl.BlockSpec((C_pad, tk), lambda i, k: (0, k)),      # w1 slice
                pl.BlockSpec((1, tk),     lambda i, k: (0, k)),      # b1 slice
                pl.BlockSpec((tk, C_pad), lambda i, k: (k, 0)),      # w2 slice
                pl.BlockSpec((1, C_pad),  lambda i, k: (0, 0)),      # b2
                pl.BlockSpec((C_pad, bn_pad), lambda i, k: (0, 0)),  # wd
                pl.BlockSpec((1, bn_pad),     lambda i, k: (0, 0)),  # bd
                pl.BlockSpec((bn_pad, C_pad), lambda i, k: (0, 0)),  # wu
                pl.BlockSpec((1, C_pad),      lambda i, k: (0, 0)),  # bu
            ],
            out_specs=pl.BlockSpec((tm, C_pad), lambda i, k: (i, 0)),
            scratch_shapes=[pltpu.VMEM((tm, C_pad), jnp.float32)],
        ),
        compiler_params=pltpu.CompilerParams(
            dimension_semantics=("parallel", "arbitrary"),
            vmem_limit_bytes=int(vmem_limit),
        ),
        cost_estimate=pl.CostEstimate(
            flops=flops,
            transcendentals=transcendentals,
            bytes_accessed=bytes_accessed,
        ),
    )(xf, w1, b1, w2, b2, wd, bd, wu, bu)

    return out[:M, :C].reshape(B, N, C)


def make_params(key, embedding_dim, mlp_dim, adapter_bn):
    # Deterministic synthetic init.  (PyTorch zero-inits adapter_up; small
    # random values are used here so the adapter path actually exercises the
    # kernel.)
    ks = jax.random.split(key, 8)
    s = 0.05
    shapes = [
        ("w1", (embedding_dim, mlp_dim)), ("b1", (1, mlp_dim)),
        ("w2", (mlp_dim, embedding_dim)), ("b2", (1, embedding_dim)),
        ("wd", (embedding_dim, adapter_bn)), ("bd", (1, adapter_bn)),
        ("wu", (adapter_bn, embedding_dim)), ("bu", (1, embedding_dim)),
    ]
    return {name: s * jax.random.normal(k, shp, jnp.float32)
            for (name, shp), k in zip(shapes, ks)}


def reference(x, params, adapter_scale=0.1, compute_dtype=jnp.bfloat16,
              gelu="tanh"):
    # Mirrors the kernel's numerics (bf16 matmul operands, f32 accumulation,
    # same GELU flavor) so the comparison is tight.
    gelu_fn = _GELU[gelu]
    cd = lambda a: a.astype(compute_dtype).astype(jnp.float32)
    B, N, C = x.shape
    xf = cd(x.reshape(-1, C))
    hp = jax.lax.Precision.HIGHEST
    h = gelu_fn(jnp.dot(xf, cd(params["w1"]), precision=hp) + params["b1"])
    mlp_out = jnp.dot(cd(h), cd(params["w2"]), precision=hp) + params["b2"]
    a = gelu_fn(jnp.dot(xf, cd(params["wd"]), precision=hp) + params["bd"])
    adpt = jnp.dot(cd(a), cd(params["wu"]), precision=hp) + params["bu"]
    return (mlp_out + adapter_scale * adpt).reshape(B, N, C)


if __name__ == "__main__":
    B, N = 2, 8                 # batch, sequence length  -> M = 16 rows
    embedding_dim = 32          # mlp.embedding_dim
    mlp_dim = 64                # SAM MLPBlock hidden dim
    adapter_bn = 16             # adapter bottleneck
    adapter_scale = 0.1

    key = jax.random.PRNGKey(0)
    kx, kp = jax.random.split(key)
    x = jax.random.normal(kx, (B, N, embedding_dim), jnp.float32)
    params = make_params(kp, embedding_dim, mlp_dim, adapter_bn)

    out = adapt_mlp_block(x, params, adapter_scale=adapter_scale)
    out = jax.block_until_ready(out)

    ref = reference(x, params, adapter_scale)
    assert out.shape == (B, N, embedding_dim)
    assert jnp.allclose(out, ref, atol=2e-3, rtol=2e-3), "mismatch vs reference"

    print("KERNEL_OK")
</pallas_src>

<mosaic_0001>
module attributes {stable_mosaic.version = 11 : i64} {
  func.func @adapt_mlp_kernel(%arg0: i32, %arg1: i32, %arg2: memref<16x128xbf16, #tpu.memory_space<vmem>>, %arg3: memref<128x128xbf16, #tpu.memory_space<vmem>>, %arg4: memref<1x128xf32, #tpu.memory_space<vmem>>, %arg5: memref<128x128xbf16, #tpu.memory_space<vmem>>, %arg6: memref<1x128xf32, #tpu.memory_space<vmem>>, %arg7: memref<128x128xbf16, #tpu.memory_space<vmem>>, %arg8: memref<1x128xf32, #tpu.memory_space<vmem>>, %arg9: memref<128x128xbf16, #tpu.memory_space<vmem>>, %arg10: memref<1x128xf32, #tpu.memory_space<vmem>>, %arg11: memref<16x128xf32, #tpu.memory_space<vmem>>, %arg12: memref<16x128xf32, #tpu.memory_space<vmem>>) attributes {dimension_semantics = [#tpu.dimension_semantics<parallel>, #tpu.dimension_semantics<arbitrary>], iteration_bounds = array<i64: 1, 1>, scalar_prefetch = 0 : i64, scratch_operands = 1 : i64, tpu.core_type = #tpu.core_type<tc>, window_params = [{transform_indices = @transform_0, window_bounds = array<i64: 16, 128>}, {transform_indices = @transform_1, window_bounds = array<i64: 128, 128>}, {transform_indices = @transform_2, window_bounds = array<i64: 1, 128>}, {transform_indices = @transform_3, window_bounds = array<i64: 128, 128>}, {pipeline_mode = #tpu.pipeline_mode<synchronous>, transform_indices = @transform_4, window_bounds = array<i64: 1, 128>}, {pipeline_mode = #tpu.pipeline_mode<synchronous>, transform_indices = @transform_5, window_bounds = array<i64: 128, 128>}, {pipeline_mode = #tpu.pipeline_mode<synchronous>, transform_indices = @transform_6, window_bounds = array<i64: 1, 128>}, {pipeline_mode = #tpu.pipeline_mode<synchronous>, transform_indices = @transform_7, window_bounds = array<i64: 128, 128>}, {pipeline_mode = #tpu.pipeline_mode<synchronous>, transform_indices = @transform_8, window_bounds = array<i64: 1, 128>}, {transform_indices = @transform_9, window_bounds = array<i64: 16, 128>}]} {
    %c0_i32 = arith.constant 0 : i32
    %0 = arith.cmpi eq, %arg1, %c0_i32 : i32
    %1 = arith.extui %0 : i1 to i32
    %c0_i32_0 = arith.constant 0 : i32
    %2 = arith.cmpi ne, %1, %c0_i32_0 : i32
    scf.if %2 {
      %c0_19 = arith.constant 0 : index
      %c0_20 = arith.constant 0 : index
      %31 = vector.load %arg2[%c0_19, %c0_20] : memref<16x128xbf16, #tpu.memory_space<vmem>>, vector<16x128xbf16>
      %c0_21 = arith.constant 0 : index
      %c0_22 = arith.constant 0 : index
      %32 = vector.load %arg7[%c0_21, %c0_22] : memref<128x128xbf16, #tpu.memory_space<vmem>>, vector<128x128xbf16>
      %cst_23 = arith.constant dense<0.000000e+00> : vector<16x128xf32>
      %33 = tpu.matmul %31, %32, %cst_23 {dimension_numbers = #tpu.dot_dimension_numbers<[1], [0], [0], [1], [0, 0, 1, 1], [], []>} : vector<16x128xbf16>, vector<128x128xbf16>, vector<16x128xf32> -> vector<16x128xf32>
      %c0_24 = arith.constant 0 : index
      %c0_25 = arith.constant 0 : index
      %34 = vector.load %arg8[%c0_24, %c0_25] : memref<1x128xf32, #tpu.memory_space<vmem>>, vector<1x128xf32>
      %35 = vector.broadcast %34 : vector<1x128xf32> to vector<16x128xf32>
      %36 = arith.addf %33, %35 : vector<16x128xf32>
      %cst_26 = arith.constant 5.000000e-01 : f32
      %37 = vector.broadcast %cst_26 : f32 to vector<16x128xf32>
      %38 = arith.mulf %37, %36 : vector<16x128xf32>
      %39 = arith.mulf %36, %36 : vector<16x128xf32>
      %40 = arith.mulf %39, %36 : vector<16x128xf32>
      %cst_27 = arith.constant 4.471500e-02 : f32
      %41 = vector.broadcast %cst_27 : f32 to vector<16x128xf32>
      %42 = arith.mulf %41, %40 : vector<16x128xf32>
      %43 = arith.addf %36, %42 : vector<16x128xf32>
      %cst_28 = arith.constant 0.797884583 : f32
      %44 = vector.broadcast %cst_28 : f32 to vector<16x128xf32>
      %45 = arith.mulf %44, %43 : vector<16x128xf32>
      %46 = math.tanh %45 : vector<16x128xf32>
      %cst_29 = arith.constant 1.000000e+00 : f32
      %47 = vector.broadcast %cst_29 : f32 to vector<16x128xf32>
      %48 = arith.addf %47, %46 : vector<16x128xf32>
      %49 = arith.mulf %38, %48 : vector<16x128xf32>
      %50 = arith.truncf %49 : vector<16x128xf32> to vector<16x128xbf16>
      %c0_30 = arith.constant 0 : index
      %c0_31 = arith.constant 0 : index
      %51 = vector.load %arg9[%c0_30, %c0_31] : memref<128x128xbf16, #tpu.memory_space<vmem>>, vector<128x128xbf16>
      %cst_32 = arith.constant dense<0.000000e+00> : vector<16x128xf32>
      %52 = tpu.matmul %50, %51, %cst_32 {dimension_numbers = #tpu.dot_dimension_numbers<[1], [0], [0], [1], [0, 0, 1, 1], [], []>} : vector<16x128xbf16>, vector<128x128xbf16>, vector<16x128xf32> -> vector<16x128xf32>
      %c0_33 = arith.constant 0 : index
      %c0_34 = arith.constant 0 : index
      %53 = vector.load %arg10[%c0_33, %c0_34] : memref<1x128xf32, #tpu.memory_space<vmem>>, vector<1x128xf32>
      %54 = vector.broadcast %53 : vector<1x128xf32> to vector<16x128xf32>
      %55 = arith.addf %52, %54 : vector<16x128xf32>
      %c0_35 = arith.constant 0 : index
      %c0_36 = arith.constant 0 : index
      %56 = vector.load %arg6[%c0_35, %c0_36] : memref<1x128xf32, #tpu.memory_space<vmem>>, vector<1x128xf32>
      %cst_37 = arith.constant 1.000000e-01 : f32
      %57 = vector.broadcast %cst_37 : f32 to vector<16x128xf32>
      %58 = arith.mulf %57, %55 : vector<16x128xf32>
      %59 = vector.broadcast %56 : vector<1x128xf32> to vector<16x128xf32>
      %60 = arith.addf %59, %58 : vector<16x128xf32>
      %c0_38 = arith.constant 0 : index
      %c0_39 = arith.constant 0 : index
      %61 = vector.load %arg12[%c0_38, %c0_39] : memref<16x128xf32, #tpu.memory_space<vmem>>, vector<16x128xf32>
      tpu.vector_store %arg12[%c0_38, %c0_39], %60 {strides = array<i32>} : memref<16x128xf32, #tpu.memory_space<vmem>>, vector<16x128xf32>,
    } else {
    }
    %c0 = arith.constant 0 : index
    %c0_1 = arith.constant 0 : index
    %3 = vector.load %arg2[%c0, %c0_1] : memref<16x128xbf16, #tpu.memory_space<vmem>>, vector<16x128xbf16>
    %c0_2 = arith.constant 0 : index
    %c0_3 = arith.constant 0 : index
    %4 = vector.load %arg3[%c0_2, %c0_3] : memref<128x128xbf16, #tpu.memory_space<vmem>>, vector<128x128xbf16>
    %cst = arith.constant dense<0.000000e+00> : vector<16x128xf32>
    %5 = tpu.matmul %3, %4, %cst {dimension_numbers = #tpu.dot_dimension_numbers<[1], [0], [0], [1], [0, 0, 1, 1], [], []>} : vector<16x128xbf16>, vector<128x128xbf16>, vector<16x128xf32> -> vector<16x128xf32>
    %c0_4 = arith.constant 0 : index
    %c0_5 = arith.constant 0 : index
    %6 = vector.load %arg4[%c0_4, %c0_5] : memref<1x128xf32, #tpu.memory_space<vmem>>, vector<1x128xf32>
    %7 = vector.broadcast %6 : vector<1x128xf32> to vector<16x128xf32>
    %8 = arith.addf %5, %7 : vector<16x128xf32>
    %cst_6 = arith.constant 5.000000e-01 : f32
    %9 = vector.broadcast %cst_6 : f32 to vector<16x128xf32>
    %10 = arith.mulf %9, %8 : vector<16x128xf32>
    %11 = arith.mulf %8, %8 : vector<16x128xf32>
    %12 = arith.mulf %11, %8 : vector<16x128xf32>
    %cst_7 = arith.constant 4.471500e-02 : f32
    %13 = vector.broadcast %cst_7 : f32 to vector<16x128xf32>
    %14 = arith.mulf %13, %12 : vector<16x128xf32>
    %15 = arith.addf %8, %14 : vector<16x128xf32>
    %cst_8 = arith.constant 0.797884583 : f32
    %16 = vector.broadcast %cst_8 : f32 to vector<16x128xf32>
    %17 = arith.mulf %16, %15 : vector<16x128xf32>
    %18 = math.tanh %17 : vector<16x128xf32>
    %cst_9 = arith.constant 1.000000e+00 : f32
    %19 = vector.broadcast %cst_9 : f32 to vector<16x128xf32>
    %20 = arith.addf %19, %18 : vector<16x128xf32>
    %21 = arith.mulf %10, %20 : vector<16x128xf32>
    %c0_10 = arith.constant 0 : index
    %c0_11 = arith.constant 0 : index
    %22 = vector.load %arg12[%c0_10, %c0_11] : memref<16x128xf32, #tpu.memory_space<vmem>>, vector<16x128xf32>
    %23 = arith.truncf %21 : vector<16x128xf32> to vector<16x128xbf16>
    %c0_12 = arith.constant 0 : index
    %c0_13 = arith.constant 0 : index
    %24 = vector.load %arg5[%c0_12, %c0_13] : memref<128x128xbf16, #tpu.memory_space<vmem>>, vector<128x128xbf16>
    %cst_14 = arith.constant dense<0.000000e+00> : vector<16x128xf32>
    %25 = tpu.matmul %23, %24, %cst_14 {dimension_numbers = #tpu.dot_dimension_numbers<[1], [0], [0], [1], [0, 0, 1, 1], [], []>} : vector<16x128xbf16>, vector<128x128xbf16>, vector<16x128xf32> -> vector<16x128xf32>
    %26 = arith.addf %22, %25 : vector<16x128xf32>
    %c0_15 = arith.constant 0 : index
    %c0_16 = arith.constant 0 : index
    %27 = vector.load %arg12[%c0_15, %c0_16] : memref<16x128xf32, #tpu.memory_space<vmem>>, vector<16x128xf32>
    tpu.vector_store %arg12[%c0_15, %c0_16], %26 {strides = array<i32>} : memref<16x128xf32, #tpu.memory_space<vmem>>, vector<16x128xf32>,
    %c0_i32_17 = arith.constant 0 : i32
    %28 = arith.cmpi eq, %arg1, %c0_i32_17 : i32
    %29 = arith.extui %28 : i1 to i32
    %c0_i32_18 = arith.constant 0 : i32
    %30 = arith.cmpi ne, %29, %c0_i32_18 : i32
    scf.if %30 {
      %c0_19 = arith.constant 0 : index
      %c0_20 = arith.constant 0 : index
      %31 = vector.load %arg12[%c0_19, %c0_20] : memref<16x128xf32, #tpu.memory_space<vmem>>, vector<16x128xf32>
      %c0_21 = arith.constant 0 : index
      %c0_22 = arith.constant 0 : index
      %32 = vector.load %arg11[%c0_21, %c0_22] : memref<16x128xf32, #tpu.memory_space<vmem>>, vector<16x128xf32>
      tpu.vector_store %arg11[%c0_21, %c0_22], %31 {strides = array<i32>} : memref<16x128xf32, #tpu.memory_space<vmem>>, vector<16x128xf32>,
    } else {
    }
    return
  }
  func.func @transform_0(%arg0: i32, %arg1: i32) -> (i32, i32) {
    %c0_i32 = arith.constant 0 : i32
    %c0_i32_0 = arith.constant 0 : i32
    return %arg0, %c0_i32 : i32, i32
  }
  func.func @transform_1(%arg0: i32, %arg1: i32) -> (i32, i32) {
    %c0_i32 = arith.constant 0 : i32
    %c0_i32_0 = arith.constant 0 : i32
    return %c0_i32, %arg1 : i32, i32
  }
  func.func @transform_2(%arg0: i32, %arg1: i32) -> (i32, i32) {
    %c0_i32 = arith.constant 0 : i32
    %c0_i32_0 = arith.constant 0 : i32
    return %c0_i32, %arg1 : i32, i32
  }
  func.func @transform_3(%arg0: i32, %arg1: i32) -> (i32, i32) {
    %c0_i32 = arith.constant 0 : i32
    %c0_i32_0 = arith.constant 0 : i32
    return %arg1, %c0_i32 : i32, i32
  }
  func.func @transform_4(%arg0: i32, %arg1: i32) -> (i32, i32) {
    %c0_i32 = arith.constant 0 : i32
    %c0_i32_0 = arith.constant 0 : i32
    %c0_i32_1 = arith.constant 0 : i32
    return %c0_i32, %c0_i32_0 : i32, i32
  }
  func.func @transform_5(%arg0: i32, %arg1: i32) -> (i32, i32) {
    %c0_i32 = arith.constant 0 : i32
    %c0_i32_0 = arith.constant 0 : i32
    %c0_i32_1 = arith.constant 0 : i32
    return %c0_i32, %c0_i32_0 : i32, i32
  }
  func.func @transform_6(%arg0: i32, %arg1: i32) -> (i32, i32) {
    %c0_i32 = arith.constant 0 : i32
    %c0_i32_0 = arith.constant 0 : i32
    %c0_i32_1 = arith.constant 0 : i32
    return %c0_i32, %c0_i32_0 : i32, i32
  }
  func.func @transform_7(%arg0: i32, %arg1: i32) -> (i32, i32) {
    %c0_i32 = arith.constant 0 : i32
    %c0_i32_0 = arith.constant 0 : i32
    %c0_i32_1 = arith.constant 0 : i32
    return %c0_i32, %c0_i32_0 : i32, i32
  }
  func.func @transform_8(%arg0: i32, %arg1: i32) -> (i32, i32) {
    %c0_i32 = arith.constant 0 : i32
    %c0_i32_0 = arith.constant 0 : i32
    %c0_i32_1 = arith.constant 0 : i32
    return %c0_i32, %c0_i32_0 : i32, i32
  }
  func.func @transform_9(%arg0: i32, %arg1: i32) -> (i32, i32) {
    %c0_i32 = arith.constant 0 : i32
    %c0_i32_0 = arith.constant 0 : i32
    return %arg0, %c0_i32 : i32, i32
  }
}

</mosaic_0001>

<bundles_post_ra>
// kernel: tpu_custom_call.1
= control target key start
LH: loop header
LB: loop body
LE: loop exit
PB: predicated region body
PF: predicated region fallthrough
CT: control target
= control target key end

     0   :  { %14 = vsyncpa [#allocation4], 0  ;;  %s1129_s0 = inlined_call_operand.hbm [shape: bf16[16,128], index: 0, kind: input, shape index: {}]   ;;  %s1130_s1 = inlined_call_operand.hbm [shape: bf16[128,128], index: 1, kind: input, shape index: {}]   ;;  %s1131_s2 = inlined_call_operand.vmem [shape: f32[1,128], index: 2, kind: input, shape index: {}]   ;;  %s1132_s3 = inlined_call_operand.hbm [shape: bf16[128,128], index: 3, kind: input, shape index: {}]   ;;  %s1133_s4 = inlined_call_operand.vmem [shape: f32[1,128], index: 4, kind: input, shape index: {}]   ;;  %s1134_s5 = inlined_call_operand.hbm [shape: bf16[128,128], index: 5, kind: input, shape index: {}]   ;;  %s1135_s6 = inlined_call_operand.vmem [shape: f32[1,128], index: 6, kind: input, shape index: {}]   ;;  %s1136_s7 = inlined_call_operand.hbm [shape: bf16[128,128], index: 7, kind: input, shape index: {}]   ;;  %s1137_s8 = inlined_call_operand.vmem [shape: f32[1,128], index: 8, kind: input, shape index: {}]   ;;  %s1138_s9 = inlined_call_operand.hbm [shape: f32[16,128], index: 9, kind: output, shape index: {}]  }
   0x1   :  { %15 = vsyncpa [#allocation7], 0 }
   0x2   :  { %16 = vsyncpa [#allocation10], 0 }
   0x3   :  { %17 = vsyncpa [#allocation5], 0  ;;  %s982_s30 = smov [#allocation6]   ;;  %s983_s11 = smov [#allocation9]  }
   0x4   :  { %s35_s10 = sshll.u32 %s982_s30, 4  ;;  %s63_s12 = sshll.u32 %s983_s11, 4  ;;  %s36_s10 = int_to_ptr.vmem [resolvable:$true] %s35_s10  ;;  %s64_s12 = int_to_ptr.vmem [resolvable:$true] %s63_s12 }
   0x5   :  { %s862_s13 = scalar_lea.vmem %s36_s10, 1024  ;;  %p867_p1 = scmp.lt.s32.totalorder %s36_s10, %s36_s10 }
   0x6   :  { %p863_p0 = scmp.ne.s32.totalorder %s36_s10, %s862_s13  ;;  %p868_p2 = scmp.lt.s32.totalorder %s862_s13, %s862_s13 }
   0x8   :  { %p869_p3 = por %p868_p2, %p867_p1 }
   0xa   :  { %p870_p4 = pnand %p869_p3, %p863_p0 }
   0xc   :  { %873 = shalt.err (!%p870_p4)
}
   0xd   :  { %s984_s14 = smov 64   ;;  %s985_s15 = smov 4  }
   0xe   :  { %41 = dma.hbm_to_vmem [thread:$0]  %s1130_s1, 1024, %s36_s10, [#allocation7], %s984_s14, %s984_s14, %s985_s15  }
   0xf   :  { %s882_s18 = scalar_lea.vmem %s64_s12, 1024  ;;  %p887_p6 = scmp.lt.s32.totalorder %s64_s12, %s64_s12 }
  0x10   :  { %p883_p5 = scmp.ne.s32.totalorder %s64_s12, %s882_s18  ;;  %p888_p7 = scmp.lt.s32.totalorder %s882_s18, %s882_s18 }
  0x12   :  { %p889_p8 = por %p888_p7, %p887_p6 }
  0x14   :  { %p890_p9 = pnand %p889_p8, %p883_p5 }
  0x16   :  { %893 = shalt.err (!%p890_p9)
}
  0x17   :  { %69 = dma.hbm_to_vmem [thread:$0]  %s1134_s5, 1024, %s64_s12, [#allocation10], %s984_s14, %s984_s14, %s985_s15  }
  0x18   :  { %s986_s21 = smov [#allocation3]   ;;  %s987_s23 = smov [#allocation8]  }
  0x19   :  { %s23_s22 = sshll.u32 %s986_s21, 4  ;;  %s49_s24 = sshll.u32 %s987_s23, 4  ;;  %s24_s22 = int_to_ptr.vmem [resolvable:$true] %s23_s22  ;;  %s50_s24 = int_to_ptr.vmem [resolvable:$true] %s49_s24 }
  0x1a   :  { %s902_s1 = scalar_lea.vmem %s24_s22, 128  ;;  %p907_p11 = scmp.lt.s32.totalorder %s24_s22, %s24_s22 }
  0x1b   :  { %p903_p10 = scmp.ne.s32.totalorder %s24_s22, %s902_s1  ;;  %p908_p12 = scmp.lt.s32.totalorder %s902_s1, %s902_s1 }
  0x1d   :  { %p909_p13 = por %p908_p12, %p907_p11 }
  0x1f   :  { %p910_p0 = pnand %p909_p13, %p903_p10 }
  0x21   :  { %913 = shalt.err (!%p910_p0)
}
  0x22   :  { %29 = dma.hbm_to_vmem [thread:$0]  %s1129_s0, 128, %s24_s22, [#allocation4], %s984_s14, %s984_s14, %s985_s15  }
  0x23   :  { %s922_s5 = scalar_lea.vmem %s50_s24, 1024  ;;  %p927_p2 = scmp.lt.s32.totalorder %s50_s24, %s50_s24 }
  0x24   :  { %p923_p1 = scmp.ne.s32.totalorder %s50_s24, %s922_s5  ;;  %p928_p3 = scmp.lt.s32.totalorder %s922_s5, %s922_s5 }
  0x26   :  { %p929_p4 = por %p928_p3, %p927_p2 }
  0x28   :  { %p930_p5 = pnand %p929_p4, %p923_p1 }
  0x2a   :  { %933 = shalt.err (!%p930_p5)
}
  0x2b   :  { %55 = dma.hbm_to_vmem [thread:$0]  %s1132_s3, 1024, %s50_s24, [#allocation7], %s984_s14, %s984_s14, %s985_s15  }
  0x2c   :  { %s988_s29 = smov [#allocation11]  }
  0x2d   :  { %s77_s30 = sshll.u32 %s988_s29, 4  ;;  %s78_s30 = int_to_ptr.vmem [resolvable:$true] %s77_s30 }
  0x2e   :  { %s942_s10 = scalar_lea.vmem %s78_s30, 1024  ;;  %p947_p7 = scmp.lt.s32.totalorder %s78_s30, %s78_s30 }
  0x2f   :  { %p943_p6 = scmp.ne.s32.totalorder %s78_s30, %s942_s10  ;;  %p948_p8 = scmp.lt.s32.totalorder %s942_s10, %s942_s10 }
  0x31   :  { %p949_p9 = por %p948_p8, %p947_p7 }
  0x33   :  { %p950_p10 = pnand %p949_p9, %p943_p6 }
  0x35   :  { %953 = shalt.err (!%p950_p10)
}
  0x36   :  { %83 = dma.hbm_to_vmem [thread:$0]  %s1136_s7, 1024, %s78_s30, [#allocation10], %s984_s14, %s984_s14, %s985_s15  }
  0x37   :  { %974 = dma.done.wait [#allocation4], 128  }
  0x38   :  { %975 = vsyncadd [#allocation4], 4294967168 }
  0x39   :  { %976 = dma.done.wait [#allocation7], 2048  }
  0x3a   :  { %977 = vsyncadd [#allocation7], 4294965248 }
  0x3b   :  { %978 = dma.done.wait [#allocation10], 2048  }
  0x3c   :  { %979 = vsyncadd [#allocation10], 4294965248  ;;  %v989_v0 = vmov 0.0   ;;  %vm990_vm0 = vmmov 0   ;;  %v812_v1 = vld [vmem:[#allocation9 + $0x38] sm:$0xff]   ;;  %v813_v2 = vld [vmem:[#allocation9 + $0x30] sm:$0xff]  }
  0x3d   :  { %720 = vmatprep.subr.bf16.mxu0 %v989_v0  ;;  %736 = vmatprep.mubr.msk.bf16.mxu0 %vm990_vm0, %v989_v0  ;;  %v814_v3 = vld [vmem:[#allocation9 + $0x28] sm:$0xff]   ;;  %v815_v4 = vld [vmem:[#allocation9 + $0x20] sm:$0xff]   ;;  %v816_v5 = vld [vmem:[#allocation9 + $0x18] sm:$0xff]   ;;  %s991_s16 = smov [#allocation12]  }
  0x3e   :  { %740 = vmatprep.subr.bf16.mxu1 %v989_v0  ;;  %756 = vmatprep.mubr.msk.bf16.mxu1 %vm990_vm0, %v989_v0  ;;  %v817_v6 = vld [vmem:[#allocation9 + $0x10] sm:$0xff]   ;;  %v818_v7 = vld [vmem:[#allocation9 + $0x8] sm:$0xff]   ;;  %v819_v8 = vld [vmem:[#allocation9] sm:$0xff]   ;;  %s632_s17 = sshll.u32 %s991_s16, 4  ;;  %s633_s17 = int_to_ptr.vmem [resolvable:$true] %s632_s17 }
  0x3f   :  { %721 = vmatpush3.bf16.msra.mxu0 %v812_v1  ;;  %v820_v9 = vld [vmem:[#allocation3] sm:$0xff]   ;;  %v822_v11 = vld [vmem:[#allocation6 + $0x30] sm:$0xff]   ;;  %v823_v12 = vld [vmem:[#allocation6 + $0x28] sm:$0xff]   ;;  %p959_p12 = scmp.lt.s32.totalorder %s633_s17, %s633_s17 }
  0x40   :  { %722 = vmatprep.subr.bf16.mxu0 %v989_v0  ;;  %v821_v10 = vld [vmem:[#allocation6 + $0x38] sm:$0xff]   ;;  %v824_v13 = vld [vmem:[#allocation6 + $0x20] sm:$0xff]   ;;  %v826_v15 = vld [vmem:[#allocation6 + $0x10] sm:$0xff]  }
  0x41   :  { %v825_v14 = vld [vmem:[#allocation6 + $0x18] sm:$0xff]   ;;  %v827_v16 = vld [vmem:[#allocation6 + $0x8] sm:$0xff]   ;;  %v828_v17 = vld [vmem:[#allocation6] sm:$0xff]  }
  0x42   :  { %v829_v18 = vld [vmem:[#allocation3] sm:$0xff]   ;;  %v831_v20 = vld [vmem:[#allocation11 + $0x30] sm:$0xff]   ;;  %v832_v21 = vld [vmem:[#allocation11 + $0x28] sm:$0xff]  }
  0x43   :  { %723 = vmatpush3.bf16.msra.mxu0 %v813_v2  ;;  %v830_v19 = vld [vmem:[#allocation11 + $0x38] sm:$0xff]   ;;  %v833_v22 = vld [vmem:[#allocation11 + $0x20] sm:$0xff]   ;;  %v835_v24 = vld [vmem:[#allocation11 + $0x10] sm:$0xff]  }
  0x44   :  { %724 = vmatprep.subr.bf16.mxu0 %v989_v0  ;;  %741 = vmatpush3.bf16.msra.mxu1 %v830_v19  ;;  %v834_v23 = vld [vmem:[#allocation11 + $0x18] sm:$0xff]   ;;  %v836_v25 = vld [vmem:[#allocation11 + $0x8] sm:$0xff]   ;;  %v837_v26 = vld [vmem:[#allocation11] sm:$0xff]  }
  0x45   :  { %742 = vmatprep.subr.bf16.mxu1 %v989_v0  ;;  %v646_v27 = vld [vmem:[%s1135_s6] ss:$0 sm:$0xff]  ;;  %v839_v63 = vld [vmem:[#allocation8 + $0x30] sm:$0xff]  }
  0x46   :  { %v666_v47 = vld [vmem:[%s1131_s2] ss:$0 sm:$0xff] }
  0x47   :  { %725 = vmatpush3.bf16.msra.mxu0 %v814_v3  ;;  %v838_v56 = vld [vmem:[#allocation8 + $0x38] sm:$0xff]  }
  0x48   :  { %726 = vmatprep.subr.bf16.mxu0 %v989_v0  ;;  %743 = vmatpush3.bf16.msra.mxu1 %v831_v20 }
  0x49   :  { %744 = vmatprep.subr.bf16.mxu1 %v989_v0 }
  0x4b   :  { %727 = vmatpush3.bf16.msra.mxu0 %v815_v4 }
  0x4c   :  { %728 = vmatprep.subr.bf16.mxu0 %v989_v0  ;;  %745 = vmatpush3.bf16.msra.mxu1 %v832_v21 }
  0x4d   :  { %746 = vmatprep.subr.bf16.mxu1 %v989_v0 }
  0x4f   :  { %729 = vmatpush3.bf16.msra.mxu0 %v816_v5  ;;  %v840_v5 = vld [vmem:[#allocation8 + $0x28] sm:$0xff]  }
  0x50   :  { %730 = vmatprep.subr.bf16.mxu0 %v989_v0  ;;  %747 = vmatpush3.bf16.msra.mxu1 %v833_v22 }
  0x51   :  { %748 = vmatprep.subr.bf16.mxu1 %v989_v0 }
  0x53   :  { %731 = vmatpush3.bf16.msra.mxu0 %v817_v6 }
  0x54   :  { %732 = vmatprep.subr.bf16.mxu0 %v989_v0  ;;  %749 = vmatpush3.bf16.msra.mxu1 %v834_v23 }
  0x55   :  { %750 = vmatprep.subr.bf16.mxu1 %v989_v0 }
  0x57   :  { %733 = vmatpush3.bf16.msra.mxu0 %v818_v7 }
  0x58   :  { %734 = vmatprep.subr.bf16.mxu0 %v989_v0  ;;  %751 = vmatpush3.bf16.msra.mxu1 %v835_v24 }
  0x59   :  { %752 = vmatprep.subr.bf16.mxu1 %v989_v0 }
  0x5b   :  { %735 = vmatpush3.bf16.msra.mxu0 %v819_v8 }
  0x5c   :  { %760 = vmatprep.subr.bf16.mxu0 %v989_v0  ;;  %753 = vmatpush3.bf16.msra.mxu1 %v836_v25 }
  0x5d   :  { %754 = vmatprep.subr.bf16.mxu1 %v989_v0 }
  0x5e   :  { %737 = vmatmul.mubr.bf16.vlgmr.msra.gmra.mxu0 %v820_v9  ;;  %v841_v9 = vld [vmem:[#allocation8 + $0x20] sm:$0xff]  }
  0x5f   :  { %761 = vmatpush3.bf16.msra.mxu0 %v821_v10  ;;  %776 = vmatprep.mubr.msk.bf16.mxu0 %vm990_vm0, %v989_v0 }
  0x60   :  { %762 = vmatprep.subr.bf16.mxu0 %v989_v0  ;;  %755 = vmatpush3.bf16.msra.mxu1 %v837_v26 }
  0x61   :  { %780 = vmatprep.subr.bf16.mxu1 %v989_v0 }
  0x63   :  { %763 = vmatpush3.bf16.msra.mxu0 %v822_v11  ;;  %v842_v11 = vld [vmem:[#allocation8 + $0x18] sm:$0xff]  }
  0x64   :  { %764 = vmatprep.subr.bf16.mxu0 %v989_v0 }
  0x67   :  { %765 = vmatpush3.bf16.msra.mxu0 %v823_v12  ;;  %v843_v12 = vld [vmem:[#allocation8 + $0x10] sm:$0xff]  }
  0x68   :  { %766 = vmatprep.subr.bf16.mxu0 %v989_v0 }
  0x6b   :  { %767 = vmatpush3.bf16.msra.mxu0 %v824_v13 }
  0x6c   :  { %768 = vmatprep.subr.bf16.mxu0 %v989_v0 }
  0x6f   :  { %769 = vmatpush3.bf16.msra.mxu0 %v825_v14  ;;  %v844_v14 = vld [vmem:[#allocation8 + $0x8] sm:$0xff]  }
  0x70   :  { %770 = vmatprep.subr.bf16.mxu0 %v989_v0 }
  0x73   :  { %771 = vmatpush3.bf16.msra.mxu0 %v826_v15 }
  0x74   :  { %772 = vmatprep.subr.bf16.mxu0 %v989_v0 }
  0x77   :  { %773 = vmatpush3.bf16.msra.mxu0 %v827_v16 }
  0x78   :  { %774 = vmatprep.subr.bf16.mxu0 %v989_v0 }
  0x7b   :  { %775 = vmatpush3.bf16.msra.mxu0 %v828_v17  ;;  %v845_v17 = vld [vmem:[#allocation8] sm:$0xff]  }
  0x7e   :  { %777 = vmatmul.mubr.bf16.vlgmr.msra.gmra.mxu0 %v829_v18 }
 0x11e   :  { %v219_v28 = vpop.f32.mrf.mxu0 }
 0x11f   :  { %v220_v29 = vadd.f32 %v646_v27, %v219_v28  ;;  %v656_v28 = vld [vmem:[%s1137_s8] ss:$0 sm:$0xff]  ;;  %s954_s8 = scalar_lea.vmem %s633_s17, 256 }
 0x120   :  { %v738_v30 = vpop.f32.mrf.mxu0  ;;  %p955_p11 = scmp.ne.s32.totalorder %s633_s17, %s954_s8  ;;  %p960_p13 = scmp.lt.s32.totalorder %s954_s8, %s954_s8 }
 0x121   :  { %v228_v31 = vmul.f32 %v220_v29, %v220_v29  ;;  %v226_v48 = vmul.f32 0.5, %v220_v29 }
 0x122   :  { %v222_v32 = vpop.f32.mrf.mxu0  ;;  %p961_p0 = por %p960_p13, %p959_p12 }
 0x123   :  { %v230_v33 = vmul.f32 %v228_v31, %v220_v29  ;;  %v223_v34 = vadd.f32 %v646_v27, %v222_v32 }
 0x124   :  { %v739_v35 = vpop.f32.mrf.mxu0  ;;  %p962_p1 = pnand %p961_p0, %p955_p11 }
 0x125   :  { %v232_v36 = vmul.f32 0.044715, %v230_v33  ;;  %v229_v37 = vmul.f32 %v223_v34, %v223_v34  ;;  %v227_v49 = vmul.f32 0.5, %v223_v34 }
 0x127   :  { %v234_v38 = vadd.f32 %v232_v36, %v220_v29  ;;  %v231_v39 = vmul.f32 %v229_v37, %v223_v34 }
 0x129   :  { %v236_v40 = vmul.f32 0.7978846, %v234_v38  ;;  %v233_v41 = vmul.f32 0.044715, %v231_v39 }
 0x12b   :  { %846 = vtanh.f32 %v236_v40  ;;  %v235_v42 = vadd.f32 %v233_v41, %v223_v34 }
 0x12d   :  { %v237_v43 = vmul.f32 0.7978846, %v235_v42 }
 0x12f   :  { %848 = vtanh.f32 %v237_v43 }
 0x138   :  { %v847_v44 = vpop.eup %846 }
 0x139   :  { %v240_v45 = vadd.f32 1.0, %v847_v44 }
 0x13b   :  { %v242_v53 = vmul.f32 %v240_v45, %v226_v48 }
 0x13c   :  { %v849_v46 = vpop.eup %848 }
 0x13d   :  { %v241_v50 = vadd.f32 1.0, %v849_v46 }
 0x13e   :  { %v483_v51 = vpop.f32.mrf.mxu0 }
 0x13f   :  { %v484_v52 = vadd.f32 %v666_v47, %v483_v51  ;;  %v243_v54 = vmul.f32 %v241_v50, %v227_v49 }
 0x140   :  { %v778_v55 = vpop.f32.mrf.mxu0 }
 0x141   :  { %v492_v57 = vmul.f32 %v484_v52, %v484_v52  ;;  %v244_v58 = vpack.c.bf16 %v243_v54, %v242_v53  ;;  %v490_v18 = vmul.f32 0.5, %v484_v52 }
 0x142   :  { %v486_v59 = vpop.f32.mrf.mxu0 }
 0x143   :  { %v494_v60 = vmul.f32 %v492_v57, %v484_v52  ;;  %v487_v61 = vadd.f32 %v666_v47, %v486_v59  ;;  %757 = vmatmul.mubr.bf16.vlgmr.msra.gmra.mxu1 %v244_v58 }
 0x144   :  { %v779_v62 = vpop.f32.mrf.mxu0  ;;  %781 = vmatpush3.bf16.msra.mxu1 %v838_v56  ;;  %796 = vmatprep.mubr.msk.bf16.mxu1 %vm990_vm0, %v989_v0 }
 0x145   :  { %v496_v1 = vmul.f32 0.044715, %v494_v60  ;;  %v493_v2 = vmul.f32 %v487_v61, %v487_v61  ;;  %782 = vmatprep.subr.bf16.mxu1 %v989_v0  ;;  %v491_v19 = vmul.f32 0.5, %v487_v61 }
 0x147   :  { %v498_v3 = vadd.f32 %v496_v1, %v484_v52  ;;  %v495_v4 = vmul.f32 %v493_v2, %v487_v61 }
 0x148   :  { %783 = vmatpush3.bf16.msra.mxu1 %v839_v63 }
 0x149   :  { %v500_v6 = vmul.f32 0.7978846, %v498_v3  ;;  %v497_v7 = vmul.f32 0.044715, %v495_v4  ;;  %784 = vmatprep.subr.bf16.mxu1 %v989_v0 }
 0x14b   :  { %850 = vtanh.f32 %v500_v6  ;;  %v499_v8 = vadd.f32 %v497_v7, %v487_v61 }
 0x14c   :  { %785 = vmatpush3.bf16.msra.mxu1 %v840_v5 }
 0x14d   :  { %v501_v10 = vmul.f32 0.7978846, %v499_v8  ;;  %786 = vmatprep.subr.bf16.mxu1 %v989_v0 }
 0x14f   :  { %852 = vtanh.f32 %v501_v10 }
 0x150   :  { %787 = vmatpush3.bf16.msra.mxu1 %v841_v9 }
 0x151   :  { %788 = vmatprep.subr.bf16.mxu1 %v989_v0 }
 0x154   :  { %789 = vmatpush3.bf16.msra.mxu1 %v842_v11 }
 0x155   :  { %790 = vmatprep.subr.bf16.mxu1 %v989_v0 }
 0x158   :  { %v851_v13 = vpop.eup %850  ;;  %791 = vmatpush3.bf16.msra.mxu1 %v843_v12 }
 0x159   :  { %792 = vmatprep.subr.bf16.mxu1 %v989_v0  ;;  %v504_v15 = vadd.f32 1.0, %v851_v13 }
 0x15b   :  { %v506_v21 = vmul.f32 %v504_v15, %v490_v18 }
 0x15c   :  { %v853_v16 = vpop.eup %852  ;;  %793 = vmatpush3.bf16.msra.mxu1 %v844_v14 }
 0x15d   :  { %794 = vmatprep.subr.bf16.mxu1 %v989_v0  ;;  %v505_v20 = vadd.f32 1.0, %v853_v16  ;;  %v665_v0 = vld [vmem:[%s1133_s4] ss:$0 sm:$0xff] }
 0x15f   :  { %v507_v22 = vmul.f32 %v505_v20, %v491_v19 }
 0x160   :  { %795 = vmatpush3.bf16.msra.mxu1 %v845_v17 }
 0x161   :  { %v510_v23 = vpack.c.bf16 %v507_v22, %v506_v21 }
 0x163   :  { %797 = vmatmul.mubr.bf16.vlgmr.msra.gmra.mxu1 %v510_v23 }
 0x203   :  { %v350_v24 = vpop.f32.mrf.mxu1 }
 0x204   :  { %v351_v29 = vadd.f32 %v656_v28, %v350_v24 }
 0x205   :  { %v758_v25 = vpop.f32.mrf.mxu1 }
 0x206   :  { %v358_v30 = vmul.f32 0.1, %v351_v29 }
 0x207   :  { %v353_v26 = vpop.f32.mrf.mxu1 }
 0x208   :  { %v354_v31 = vadd.f32 %v656_v28, %v353_v26  ;;  %v366_v33 = vadd.f32 %v665_v0, %v358_v30 }
 0x209   :  { %v759_v27 = vpop.f32.mrf.mxu1 }
 0x20a   :  { %v359_v32 = vmul.f32 0.1, %v354_v31 }
 0x20c   :  { %v367_v37 = vadd.f32 %v665_v0, %v359_v32 }
 0x223   :  { %v609_v34 = vpop.f32.mrf.mxu1 }
 0x224   :  { %v616_v35 = vadd.f32 %v609_v34, %v366_v33 }
 0x225   :  { %v798_v36 = vpop.f32.mrf.mxu1 }
 0x226   :  { %625 = vst [vmem:[#allocation12] sm:$0xff] %v616_v35 }
 0x227   :  { %v612_v38 = vpop.f32.mrf.mxu1 }
 0x228   :  { %v617_v39 = vadd.f32 %v612_v38, %v367_v37 }
 0x229   :  { %v799_v40 = vpop.f32.mrf.mxu1 }
 0x22a   :  { %626 = vst [vmem:[#allocation12 + $0x8] sm:$0xff] %v617_v39 }
 0x22b   :  { %965 = shalt.err (!%p962_p1)
}
 0x22c   :  { %s992_s4 = smov 128   ;;  %s993_s18 = smov 8  }
 0x22d   :  { %638 = dma.vmem_to_hbm [thread:$0]  %s633_s17, 256, %s1138_s9, [#allocation5], %s992_s4, %s992_s4, %s993_s18  }
 0x22e   :  { %980 = dma.done.wait [#allocation5], 256  }
 0x22f   :  { %981 = vsyncadd [#allocation5], 4294967040 }
 0x230   :  { %642 = vsyncpa [#allocation4], 1 }
 0x231   :  { %643 = vsyncpa [#allocation7], 1 }
 0x232   :  { %644 = vsyncpa [#allocation10], 1 }
 0x233   :  { %645 = vsyncpa [#allocation5], 1 }

</bundles_post_ra>
